<compile_context>
chip_gen: v7x
topology: tpu7x:2x2x1
jax: 0.10.0
libtpu: 0.0.40
codegen_flags: <defaults>
</compile_context>

<pallas_src>
import functools

import jax
import jax.numpy as jnp
from jax.experimental import pallas as pl
from jax.experimental.pallas import tpu as pltpu

S_SCALE = 10.0  # the module hard-codes self.s = 10 regardless of the `s` argument


def _round_up(n, m):
    return ((n + m - 1) // m) * m


def _fsl_margin_loss_kernel(x_ref, side_ref, out_ref, acc_ref, riota_ref, *,
                            batch_size, tb, nb_inner):
    """One (core, batch-block) step of the streamed margin cross-entropy.

    x_ref    : (tb, C) native dtype          logits block
    side_ref : (tb, 2) f32                   [s*x_t, s*(x_t + margin)]
    out_ref  : (8, 128) f32                  per-core partial-sum slab
    acc_ref  : (tb, 1) f32 VMEM scratch      per-row loss accumulator
    riota_ref: (tb, 1) i32 VMEM scratch      hoisted row iota
    """
    p = pl.program_id(0)          # core / outer (parallel) axis
    i = pl.program_id(1)          # batch-block / inner (arbitrary) axis

    @pl.when(i == 0)
    def _init():
        acc_ref[...] = jnp.zeros_like(acc_ref)
        riota_ref[...] = jax.lax.broadcasted_iota(jnp.int32, riota_ref.shape, 0)

    x = x_ref[...].astype(jnp.float32)              # cast in-register, not in HBM
    side = side_ref[...]
    s_xt = side[:, 0:1]                             # (tb,1)  s * x[target]
    s_zt = side[:, 1:2]                             # (tb,1)  s * (x[target] + margin)

    sx = S_SCALE * x                                # (tb, C)
    row_max = jnp.maximum(jnp.max(sx, axis=1, keepdims=True), s_zt)      # (tb,1)
    sumexp = jnp.sum(jnp.exp(sx - row_max), axis=1, keepdims=True)       # (tb,1)
    # Swap the target column's contribution for its margin-shifted value.
    # NOTE: exact here because diag(m_list)==0; for hypothetical negative
    # margins this subtraction would be mildly cancellation-prone.
    sumexp = sumexp - jnp.exp(s_xt - row_max) + jnp.exp(s_zt - row_max)
    per_sample = row_max + jnp.log(sumexp) - s_zt                        # (tb,1)

    # Mask tail / redundant-block rows (their x may be garbage -> NaN-safe select).
    row0 = (p * nb_inner + i) * tb
    valid = (riota_ref[...] + row0) < batch_size
    acc_ref[...] += jnp.where(valid, per_sample, 0.0)

    @pl.when(i == pl.num_programs(1) - 1)
    def _finish():
        total = jnp.sum(acc_ref[...])
        out_ref[...] = jnp.broadcast_to(total, out_ref.shape).astype(jnp.float32)


def fsl_margin_loss(x, target, m_list, *, block_rows=None):
    """x: (B, C) float (any float dtype), target: (B,) int, m_list: (C, C) float.
    Returns the scalar f32 loss = mean_i CE(10 * output_i, target_i)."""
    B, C = x.shape
    target = target.astype(jnp.int32)

    # O(B) per-row sidecar gathered once in the wrapper (x itself is NOT copied):
    #   x_t = x[i, target[i]],  z_t = x_t + m_list[target[i], target[i]]
    x_t = jnp.take_along_axis(x, target[:, None], axis=1)[:, 0].astype(jnp.float32)
    diag_margin = jnp.diagonal(m_list).astype(jnp.float32)[target]
    side = S_SCALE * jnp.stack([x_t, x_t + diag_margin], axis=1)      # (B, 2) f32

    # Batch-block sizing by bytes (f32 basis, conservative for f32 intermediates),
    # row-capped so lane-padded (tb,1) temporaries / scratch stay small in VMEM.
    TARGET_BLOCK_BYTES = 2 * 1024 * 1024
    ROW_CAP = 2048
    tb = (TARGET_BLOCK_BYTES // (4 * C)) // 8 * 8
    tb = max(8, min(tb, ROW_CAP, _round_up(B, 8)))
    if block_rows is not None:                      # test hook
        tb = max(8, _round_up(min(block_rows, _round_up(B, 8)), 8))

    nb = pl.cdiv(B, tb)               # number of real batch blocks
    n_par = 2 if nb >= 2 else 1       # split across TensorCores (v7x megacore)
    nb_inner = pl.cdiv(nb, n_par)

    def blk_idx(pp, ii):
        # Clamp so the (at most one) redundant trailing block just re-reads the
        # last real block; its rows are masked out in-kernel via `valid`.
        return (jnp.minimum(pp * nb_inner + ii, nb - 1), 0)

    # TODO(synk): for very large C an online (flash-style) logsumexp over C tiles
    # would be needed; here a full (tb, C) row block is assumed to fit VMEM.
    out = pl.pallas_call(
        functools.partial(_fsl_margin_loss_kernel,
                          batch_size=B, tb=tb, nb_inner=nb_inner),
        out_shape=jax.ShapeDtypeStruct((n_par * 8, 128), jnp.float32),
        grid_spec=pltpu.PrefetchScalarGridSpec(
            num_scalar_prefetch=0,
            grid=(n_par, nb_inner),
            in_specs=[
                pl.BlockSpec((tb, C), blk_idx),    # x, streamed in native dtype
                pl.BlockSpec((tb, 2), blk_idx),    # packed [s*x_t, s*z_t] sidecar
            ],
            out_specs=pl.BlockSpec((8, 128), lambda pp, ii: (pp, 0)),
            scratch_shapes=[
                pltpu.VMEM((tb, 1), jnp.float32),  # per-row loss accumulator
                pltpu.VMEM((tb, 1), jnp.int32),    # hoisted row iota
            ],
        ),
        compiler_params=pltpu.CompilerParams(
            dimension_semantics=("parallel", "arbitrary"),
            vmem_limit_bytes=48 * 1024 * 1024,
        ),
    )(x, side)

    partials = out.reshape(n_par, 8, 128)[:, 0, 0]       # per-core partial sums
    return jnp.sum(partials) / jnp.float32(B)


def build_m_list(key, num_classes, max_m=0.3):
    """Synthetic margin matrix M, processed as in FSL_MarginLoss.__init__:
    scale by max_m / max(M), then zero the diagonal."""
    M = jax.random.uniform(key, (num_classes, num_classes), dtype=jnp.float32,
                           minval=0.1, maxval=1.0)
    M = M * (max_m / jnp.max(M))
    M = M * (1.0 - jnp.eye(num_classes, dtype=jnp.float32))   # fill_diagonal 0
    return M


def _reference(x, target, m_list):
    """Pure-JAX replica of the PyTorch forward."""
    B, C = x.shape
    onehot = jax.nn.one_hot(target, C, dtype=jnp.float32)
    margins = m_list[target]
    out = jnp.where(onehot > 0.5, x.astype(jnp.float32) + margins, x.astype(jnp.float32))
    logits = S_SCALE * out
    return jnp.mean(jax.nn.logsumexp(logits, axis=1)
                    - jnp.sum(onehot * logits, axis=1))


if __name__ == "__main__":
    key = jax.random.PRNGKey(0)
    k_m, k_x, k_t, k_x2, k_t2 = jax.random.split(key, 5)

    # Test 1: small single-block case.
    B, C = 8, 16
    m_list = build_m_list(k_m, C, max_m=0.3)
    x = jax.random.normal(k_x, (B, C), dtype=jnp.float32)
    target = jax.random.randint(k_t, (B,), 0, C, dtype=jnp.int32)
    loss = fsl_margin_loss(x, target, m_list)
    jax.block_until_ready(loss)
    ref = _reference(x, target, m_list)
    assert jnp.allclose(loss, ref, atol=1e-5, rtol=1e-5), (loss, ref)

    # Test 2: multi-block grid with a partial tail block and the two-way
    # (megacore-style) outer split + one redundant clamped block.
    B2 = 37
    x2 = jax.random.normal(k_x2, (B2, C), dtype=jnp.float32)
    target2 = jax.random.randint(k_t2, (B2,), 0, C, dtype=jnp.int32)
    loss2 = fsl_margin_loss(x2, target2, m_list, block_rows=8)
    jax.block_until_ready(loss2)
    ref2 = _reference(x2, target2, m_list)
    assert jnp.allclose(loss2, ref2, atol=1e-5, rtol=1e-5), (loss2, ref2)

    print("KERNEL_OK")
</pallas_src>

<mosaic_0001>
module attributes {stable_mosaic.version = 11 : i64} {
  func.func @_fsl_margin_loss_kernel(%arg0: i32, %arg1: i32, %arg2: memref<8x16xf32, #tpu.memory_space<vmem>>, %arg3: memref<8x2xf32, #tpu.memory_space<vmem>>, %arg4: memref<8x128xf32, #tpu.memory_space<vmem>>, %arg5: memref<8x1xf32, #tpu.memory_space<vmem>>, %arg6: memref<8x1xi32, #tpu.memory_space<vmem>>) attributes {dimension_semantics = [#tpu.dimension_semantics<parallel>, #tpu.dimension_semantics<arbitrary>], iteration_bounds = array<i64: 1, 1>, scalar_prefetch = 0 : i64, scratch_operands = 2 : i64, tpu.core_type = #tpu.core_type<tc>, window_params = [{transform_indices = @transform_0, window_bounds = array<i64: 8, 16>}, {transform_indices = @transform_1, window_bounds = array<i64: 8, 2>}, {transform_indices = @transform_2, window_bounds = array<i64: 8, 128>}]} {
    %c0_i32 = arith.constant 0 : i32
    %0 = arith.cmpi eq, %arg1, %c0_i32 : i32
    %1 = arith.extui %0 : i1 to i32
    %c0_i32_0 = arith.constant 0 : i32
    %2 = arith.cmpi ne, %1, %c0_i32_0 : i32
    scf.if %2 {
      %cst_16 = arith.constant 0.000000e+00 : f32
      %42 = vector.broadcast %cst_16 : f32 to vector<8x1xf32>
      %c0_17 = arith.constant 0 : index
      %c0_18 = arith.constant 0 : index
      %43 = vector.load %arg5[%c0_17, %c0_18] : memref<8x1xf32, #tpu.memory_space<vmem>>, vector<8x1xf32>
      tpu.vector_store %arg5[%c0_17, %c0_18], %42 {strides = array<i32>} : memref<8x1xf32, #tpu.memory_space<vmem>>, vector<8x1xf32>,
      %44 = tpu.iota {dimensions = array<i32: 0>} : vector<8x1xi32>
      %c0_19 = arith.constant 0 : index
      %c0_20 = arith.constant 0 : index
      %45 = vector.load %arg6[%c0_19, %c0_20] : memref<8x1xi32, #tpu.memory_space<vmem>>, vector<8x1xi32>
      tpu.vector_store %arg6[%c0_19, %c0_20], %44 {strides = array<i32>} : memref<8x1xi32, #tpu.memory_space<vmem>>, vector<8x1xi32>,
    } else {
    }
    %c0 = arith.constant 0 : index
    %c0_1 = arith.constant 0 : index
    %3 = vector.load %arg2[%c0, %c0_1] : memref<8x16xf32, #tpu.memory_space<vmem>>, vector<8x16xf32>
    %c0_2 = arith.constant 0 : index
    %c0_3 = arith.constant 0 : index
    %4 = vector.load %arg3[%c0_2, %c0_3] : memref<8x2xf32, #tpu.memory_space<vmem>>, vector<8x2xf32>
    %5 = vector.extract_strided_slice %4 {offsets = [0, 0], sizes = [8, 1], strides = [1, 1]} : vector<8x2xf32> to vector<8x1xf32>
    %6 = vector.extract_strided_slice %4 {offsets = [0, 1], sizes = [8, 1], strides = [1, 1]} : vector<8x2xf32> to vector<8x1xf32>
    %cst = arith.constant 1.000000e+01 : f32
    %7 = vector.broadcast %cst : f32 to vector<8x16xf32>
    %8 = arith.mulf %7, %3 : vector<8x16xf32>
    %cst_4 = arith.constant dense<0xFF800000> : vector<8xf32>
    %9 = vector.multi_reduction <maximumf>, %8, %cst_4 [1] : vector<8x16xf32> to vector<8xf32>
    %10 = vector.shape_cast %9 : vector<8xf32> to vector<8x1xf32>
    %11 = arith.maximumf %10, %6 : vector<8x1xf32>
    %12 = vector.broadcast %11 : vector<8x1xf32> to vector<8x16xf32>
    %13 = arith.subf %8, %12 : vector<8x16xf32>
    %14 = math.exp %13 : vector<8x16xf32>
    %cst_5 = arith.constant dense<0.000000e+00> : vector<8xf32>
    %15 = vector.multi_reduction <add>, %14, %cst_5 [1] : vector<8x16xf32> to vector<8xf32>
    %16 = vector.shape_cast %15 : vector<8xf32> to vector<8x1xf32>
    %17 = arith.subf %5, %11 : vector<8x1xf32>
    %18 = math.exp %17 : vector<8x1xf32>
    %19 = arith.subf %16, %18 : vector<8x1xf32>
    %20 = arith.subf %6, %11 : vector<8x1xf32>
    %21 = math.exp %20 : vector<8x1xf32>
    %22 = arith.addf %19, %21 : vector<8x1xf32>
    %23 = math.log %22 : vector<8x1xf32>
    %24 = arith.addf %11, %23 : vector<8x1xf32>
    %25 = arith.subf %24, %6 : vector<8x1xf32>
    %c1_i32 = arith.constant 1 : i32
    %26 = arith.muli %arg0, %c1_i32 : i32
    %27 = arith.addi %26, %arg1 : i32
    %c8_i32 = arith.constant 8 : i32
    %28 = arith.muli %27, %c8_i32 : i32
    %c0_6 = arith.constant 0 : index
    %c0_7 = arith.constant 0 : index
    %29 = vector.load %arg6[%c0_6, %c0_7] : memref<8x1xi32, #tpu.memory_space<vmem>>, vector<8x1xi32>
    %30 = vector.broadcast %28 : i32 to vector<8x1xi32>
    %31 = arith.addi %29, %30 : vector<8x1xi32>
    %c8_i32_8 = arith.constant 8 : i32
    %32 = vector.broadcast %c8_i32_8 : i32 to vector<8x1xi32>
    %33 = arith.cmpi slt, %31, %32 : vector<8x1xi32>
    %c0_9 = arith.constant 0 : index
    %c0_10 = arith.constant 0 : index
    %34 = vector.load %arg5[%c0_9, %c0_10] : memref<8x1xf32, #tpu.memory_space<vmem>>, vector<8x1xf32>
    %cst_11 = arith.constant 0.000000e+00 : f32
    %35 = vector.broadcast %cst_11 : f32 to vector<8x1xf32>
    %36 = arith.select %33, %25, %35 : vector<8x1xi1>, vector<8x1xf32>
    %37 = arith.addf %34, %36 : vector<8x1xf32>
    %c0_12 = arith.constant 0 : index
    %c0_13 = arith.constant 0 : index
    %38 = vector.load %arg5[%c0_12, %c0_13] : memref<8x1xf32, #tpu.memory_space<vmem>>, vector<8x1xf32>
    tpu.vector_store %arg5[%c0_12, %c0_13], %37 {strides = array<i32>} : memref<8x1xf32, #tpu.memory_space<vmem>>, vector<8x1xf32>,
    %c0_i32_14 = arith.constant 0 : i32
    %39 = arith.cmpi eq, %arg1, %c0_i32_14 : i32
    %40 = arith.extui %39 : i1 to i32
    %c0_i32_15 = arith.constant 0 : i32
    %41 = arith.cmpi ne, %40, %c0_i32_15 : i32
    scf.if %41 {
      %c0_16 = arith.constant 0 : index
      %c0_17 = arith.constant 0 : index
      %42 = vector.load %arg5[%c0_16, %c0_17] : memref<8x1xf32, #tpu.memory_space<vmem>>, vector<8x1xf32>
      %43 = vector.shape_cast %42 : vector<8x1xf32> to vector<1x8x1xf32>
      %cst_18 = arith.constant dense<0.000000e+00> : vector<1xf32>
      %44 = vector.multi_reduction <add>, %43, %cst_18 [1, 2] : vector<1x8x1xf32> to vector<1xf32>
      %45 = vector.shape_cast %44 : vector<1xf32> to vector<1x1x1xf32>
      %46 = vector.extract %45[0, 0, 0] : f32 from vector<1x1x1xf32>
      %47 = vector.broadcast %46 : f32 to vector<8x128xf32>
      %c0_19 = arith.constant 0 : index
      %c0_20 = arith.constant 0 : index
      %48 = vector.load %arg4[%c0_19, %c0_20] : memref<8x128xf32, #tpu.memory_space<vmem>>, vector<8x128xf32>
      tpu.vector_store %arg4[%c0_19, %c0_20], %47 {strides = array<i32>} : memref<8x128xf32, #tpu.memory_space<vmem>>, vector<8x128xf32>,
    } else {
    }
    return
  }
  func.func @transform_0(%arg0: i32, %arg1: i32) -> (i32, i32) {
    %c1_i32 = arith.constant 1 : i32
    %0 = arith.muli %arg0, %c1_i32 : i32
    %1 = arith.addi %0, %arg1 : i32
    %c0_i32 = arith.constant 0 : i32
    %2 = arith.minsi %1, %c0_i32 : i32
    %c0_i32_0 = arith.constant 0 : i32
    %c0_i32_1 = arith.constant 0 : i32
    return %2, %c0_i32_0 : i32, i32
  }
  func.func @transform_1(%arg0: i32, %arg1: i32) -> (i32, i32) {
    %c1_i32 = arith.constant 1 : i32
    %0 = arith.muli %arg0, %c1_i32 : i32
    %1 = arith.addi %0, %arg1 : i32
    %c0_i32 = arith.constant 0 : i32
    %2 = arith.minsi %1, %c0_i32 : i32
    %c0_i32_0 = arith.constant 0 : i32
    %c0_i32_1 = arith.constant 0 : i32
    return %2, %c0_i32_0 : i32, i32
  }
  func.func @transform_2(%arg0: i32, %arg1: i32) -> (i32, i32) {
    %c0_i32 = arith.constant 0 : i32
    %c0_i32_0 = arith.constant 0 : i32
    return %arg0, %c0_i32 : i32, i32
  }
}

</mosaic_0001>

<bundles_post_ra>
// kernel: tpu_custom_call.1
= control target key start
LH: loop header
LB: loop body
LE: loop exit
PB: predicated region body
PF: predicated region fallthrough
CT: control target
= control target key end

     0   :  { %vm78_vm0 = vcmask 130048   ;;  %s261_s0 = inlined_call_operand.vmem [shape: f32[8,16], index: 0, kind: input, shape index: {}]   ;;  %s262_s1 = inlined_call_operand.vmem [shape: f32[8,2], index: 1, kind: input, shape index: {}]   ;;  %s263_s2 = inlined_call_operand.hbm [shape: f32[8,128], index: 2, kind: output, shape index: {}]  }
   0x1   :  { %v75_v0 = vld [vmem:[%s261_s0] sm:$0xff] }
   0x2   :  { %7 = vsyncpa [#allocation5], 0  ;;  %v77_v1 = vmul.f32 10.0, %v75_v0  ;;  %v214_v3 = vmov 1   ;;  %v76_v4 = vld [vmem:[%s262_s1] sm:$0xff]  ;;  %s215_s13 = smov 127   ;;  %v72_v25 = vlaneseq }
   0x3   :  { %181 = vset.pattern.permute.xlu0 %v214_v3  ;;  %s216_s0 = smov 1   ;;  %vm70_vm1 = vcmask 7168   ;;  %v217_v27 = vmov 0.0   ;;  %s218_s1 = smov [#allocation4]  }
   0x4   :  { %v79_v2 = vsel %vm78_vm0, %v77_v1, -inf  ;;  %v73_v26 = vshrl.u32 %v72_v25, 7  ;;  %71 = vst.msk [vmem:[#allocation2] sm:$0xff] %vm70_vm1, %v217_v27  ;;  %s154_s14 = sshll.u32 %s218_s1, 4  ;;  %s155_s14 = int_to_ptr.vmem [resolvable:$true] %s154_s14 }
   0x5   :  { %80 = vmax.xlane.f32.xlu0 %v79_v2  ;;  %s190_s16 = scalar_lea.vmem %s155_s14, 128  ;;  %p195_p1 = scmp.lt.s32.totalorder %s155_s14, %s155_s14 }
   0x6   :  { %74 = vst.msk [vmem:[#allocation3] sm:$0xff] %vm70_vm1, %v73_v26  ;;  %p191_p0 = scmp.ne.s32.totalorder %s155_s14, %s190_s16  ;;  %p196_p2 = scmp.lt.s32.totalorder %s190_s16, %s190_s16 }
   0x8   :  { %p197_p3 = por %p196_p2, %p195_p1 }
   0xa   :  { %p198_p4 = pnand %p197_p3, %p191_p0 }
   0xb   :  { %v123_v32 = vld [vmem:[#allocation2] sm:$0xff] }
   0xd   :  { %v119_v31 = vld [vmem:[#allocation3] sm:$0xff] }
   0xe   :  { %vm122_vm2 = vcmp.lt.s32.totalorder %v119_v31, 8 }
  0x92   :  { %v81_v5 = vpop.xlane.xlu0 %80 }
  0x93   :  { %v82_v6 = vmax.f32 %v81_v5, %v76_v4 }
  0x95   :  { %94 = vrot.lane.b32.xlu1 %v82_v6, %s215_s13  ;;  %85 = vperm.xlu0 %181, %v82_v6   ;;  %v101_v11 = vsub.f32 %v76_v4, %v82_v6 }
  0x97   :  { %v102_v13 = vmul.f32 1.442695, %v101_v11 }
 0x107   :  { %v95_v15 = vpop.permute.xlu1 %94 }
 0x108   :  { %v97_v16 = vsub.f32 %v76_v4, %v95_v15 }
 0x10a   :  { %v98_v17 = vmul.f32 1.442695, %v97_v16 }
 0x114   :  { %v86_v7 = vpop.permute.xlu0 %85 }
 0x115   :  { %v88_v8 = vsub.f32 %v77_v1, %v86_v7 }
 0x117   :  { %v89_v9 = vmul.f32 1.442695, %v88_v8 }
 0x119   :  { %182 = vpow2.f32 %v89_v9 }
 0x11a   :  { %184 = vpow2.f32 %v102_v13 }
 0x11b   :  { %186 = vpow2.f32 %v98_v17 }
 0x123   :  { %v183_v10 = vpop.eup %182 }
 0x124   :  { %v91_v12 = vsel %vm78_vm0, %v183_v10, 0.0  ;;  %v185_v14 = vpop.eup %184 }
 0x125   :  { %92 = vadd.xlane.f32.xlu1 %v91_v12  ;;  %v187_v19 = vpop.eup %186 }
 0x136   :  { %105 = vrot.lane.b32.xlu1 %v185_v14, %s215_s13 }
 0x1b2   :  { %v93_v18 = vpop.xlane.xlu1 %92 }
 0x1b3   :  { %v100_v20 = vsub.f32 %v93_v18, %v187_v19 }
 0x1b6   :  { %v106_v21 = vpop.permute.xlu1 %105 }
 0x1b7   :  { %v108_v22 = vadd.f32 %v106_v21, %v100_v20 }
 0x1b9   :  { %188 = vlog2.f32 %v108_v22 }
 0x1c3   :  { %v189_v23 = vpop.eup %188 }
 0x1c4   :  { %v110_v24 = vmul.f32 0.6931472, %v189_v23 }
 0x1c6   :  { %112 = vrot.lane.b32.xlu0 %v110_v24, %s216_s0 }
 0x238   :  { %v113_v28 = vpop.permute.xlu0 %112 }
 0x239   :  { %v115_v29 = vadd.f32 %v113_v28, %v82_v6 }
 0x23b   :  { %v116_v30 = vsub.f32 %v115_v29, %v76_v4 }
 0x23d   :  { %125 = vrot.lane.b32.xlu0 %v116_v30, %s215_s13 }
 0x2af   :  { %v126_v33 = vpop.permute.xlu0 %125 }
 0x2b0   :  { %v128_v34 = vsel %vm122_vm2, %v126_v33, 0.0 }
 0x2b1   :  { %v129_v35 = vadd.f32 %v128_v34, %v123_v32 }
 0x2b3   :  { %131 = vst.msk [vmem:[#allocation2] sm:$0xff] %vm70_vm1, %v129_v35 }
 0x2ba   :  { %v135_v36 = vld [vmem:[#allocation2] sm:$0xff] }
 0x2bb   :  { %v136_v37 = vsel %vm70_vm1, %v135_v36, 0.0 }
 0x2bc   :  { %137 = vadd.xlane.f32.xlu0 %v136_v37 }
 0x349   :  { %v138_v38 = vpop.xlane.xlu0 %137 }
 0x34a   :  { %v139_v39 = vrot.slane %v138_v38, 4 }
 0x34c   :  { %v140_v40 = vadd.f32 %v139_v39, %v138_v38 }
 0x34e   :  { %v141_v41 = vrot.slane %v140_v40, 2 }
 0x350   :  { %v142_v42 = vadd.f32 %v141_v41, %v140_v40 }
 0x352   :  { %v143_v43 = vrot.slane %v142_v42, 1 }
 0x354   :  { %v144_v44 = vadd.f32 %v143_v43, %v142_v42 }
 0x356   :  { %174 = vpush %v144_v44 }
 0x387   :  { %s175_s15 = spop %174 }
 0x388   :  { %v146_v45 = vstv %s175_s15 }
 0x389   :  { %147 = vst [vmem:[#allocation4] sm:$0xff] %v146_v45 }
 0x38a   :  { %201 = shalt.err (!%p198_p4)
}
 0x38b   :  { %s202_s19 = scalar_lea.hbm %s263_s2, 128 }
 0x38c   :  { %p203_p5 = scmp.ne.s32.totalorder %s263_s2, %s202_s19  ;;  %p206_p6 = scmp.lt.u32.totalorder %s202_s19, %s263_s2 }
 0x38e   :  { %p208_p7 = pnand %p206_p6, %p203_p5 }
 0x390   :  { %211 = shalt.err (!%p208_p7)
}
 0x391   :  { %157 = dma.vmem_to_hbm [thread:$0]  %s155_s14, 128, %s263_s2, [#allocation5]  }
 0x392   :  { %212 = dma.done.wait [#allocation5], 128  }
 0x393   :  { %213 = vsyncadd [#allocation5], 4294967168 }
 0x394   :  { %161 = vsyncpa [#allocation5], 1 }

</bundles_post_ra>
